<compile_context>
chip_gen: v7x
topology: tpu7x:2x2x1
jax: 0.10.0
libtpu: 0.0.40
codegen_flags: <defaults>
</compile_context>

<pallas_src>
import functools

import jax
import jax.numpy as jnp
import numpy as np
from jax.experimental import pallas as pl
from jax.experimental.pallas import tpu as pltpu

# ----------------------------- problem sizes --------------------------------
B = 2                      # batch
C, H, W = 4, 16, 16
F_IN = C * H * W           # flattened image features (1024)
ENC_SIZE = 32              # embed_dim of the attention
EMB_DEPTH = 16             # kdim / vdim
N_ACTIONS = 8              # number of actions == number of key/value tokens
NUM_HEADS = 4
HEAD_DIM = ENC_SIZE // NUM_HEADS
HA = NUM_HEADS * N_ACTIONS           # 32 (head-major score lanes)

# ------------------------- packed parameter slab -----------------------------
# layout of the single small-parameter slab (rows, 32) f32:
ROW_WQK = 0                          # rows [0, 32)   : Wq @ Kp            (E, HA)
ROW_GG = ROW_WQK + ENC_SIZE          # rows [32, 64)  : block-ones gg      (HA, HA)
ROW_VPH = ROW_GG + HA                # rows [64, 96)  : Vp @ Wh            (HA, A) in cols [0, 8)
ROW_BE = ROW_VPH + HA                # row 96         : encoder bias       (E,)
ROW_BS = ROW_BE + 1                  # row 97         : bq @ Kp            (HA,)
ROW_BL = ROW_BS + 1                  # row 98         : bo @ Wh + bh       (A,) in cols [0, 8)
SLAB_ROWS = 104                      # padded to a multiple of 8 sublanes
SLAB_COLS = 32


# ------------------------------- kernel -------------------------------------
def dqn_kernel(x_ref, we_ref, slab_ref, out_ref):
    # ---- synthetic encoder: flatten -> Linear (bf16 MXU, f32 acc) -> ReLU ----
    # TODO(synk): real Encoder class not provided in the reference.
    xb = x_ref[...].astype(jnp.bfloat16)                              # (B, F_IN)
    enc = jnp.dot(xb, we_ref[...], preferred_element_type=jnp.float32)
    enc = enc + slab_ref[ROW_BE:ROW_BE + 1, :]                        # + be
    enc = jnp.maximum(enc, 0.0)                                       # (B, E)

    # ---- fused q-projection + all-head scaled attention scores (one matmul) ----
    s = jnp.dot(enc, slab_ref[ROW_WQK:ROW_WQK + ENC_SIZE, :],
                preferred_element_type=jnp.float32)
    s = s + slab_ref[ROW_BS:ROW_BS + 1, :]                            # (B, HA), head-major
    # per-row shift (constant within every head group -> per-head softmax unchanged)
    s = s - jnp.max(s, axis=-1, keepdims=True)
    es = jnp.exp(s)
    # per-head denominators broadcast back to every lane of the head (block-ones matmul)
    den = jnp.dot(es, slab_ref[ROW_GG:ROW_GG + HA, :],
                  preferred_element_type=jnp.float32)                 # (B, HA)
    p = es * pl.reciprocal(den, approx=True)                          # per-head softmax weights

    # ---- fused (attn @ Wo + bo) @ Wh + bh  ==  p @ vph + bl ----
    logits = jnp.dot(p, slab_ref[ROW_VPH:ROW_VPH + HA, 0:N_ACTIONS],
                     preferred_element_type=jnp.float32)
    logits = logits + slab_ref[ROW_BL:ROW_BL + 1, 0:N_ACTIONS]        # (B, A)

    # ---- final softmax over actions ----
    logits = logits - jnp.max(logits, axis=-1, keepdims=True)
    e = jnp.exp(logits)
    out_ref[...] = e * pl.reciprocal(jnp.sum(e, axis=-1, keepdims=True), approx=True)


# ------------------------------- wrapper -------------------------------------
def pack_params(p):
    """Fold all batch-independent linear algebra and pack small params into one slab."""
    scale = 1.0 / np.sqrt(HEAD_DIM)
    K = p["emb"] @ p["wk"] + p["bk"]                                  # (A, E)
    V = p["emb"] @ p["wv"] + p["bv"]                                  # (A, E)

    # block-diagonal scaled key matrix: kp[h*hd+d, h*A+a] = K[a, h*hd+d] * scale
    kp = jnp.zeros((ENC_SIZE, HA), jnp.float32)
    for h in range(NUM_HEADS):
        kp = kp.at[h * HEAD_DIM:(h + 1) * HEAD_DIM,
                   h * N_ACTIONS:(h + 1) * N_ACTIONS].set(
            K[:, h * HEAD_DIM:(h + 1) * HEAD_DIM].T * scale)
    wqk = p["wq"] @ kp                                                # (E, HA)
    bs = p["bq"] @ kp                                                 # (1, HA)

    # per-head values with out_proj folded, rows ordered h*A + a, then head Linear folded
    vp = jnp.concatenate(
        [V[:, h * HEAD_DIM:(h + 1) * HEAD_DIM]
         @ p["wo"][h * HEAD_DIM:(h + 1) * HEAD_DIM, :]
         for h in range(NUM_HEADS)], axis=0)                          # (HA, E)
    vph = vp @ p["wh"]                                                # (HA, A)
    bl = p["bo"] @ p["wh"] + p["bh"]                                  # (1, A)

    # block-ones matrix for per-head softmax denominator broadcast
    gg = jnp.kron(jnp.eye(NUM_HEADS, dtype=jnp.float32),
                  jnp.ones((N_ACTIONS, N_ACTIONS), jnp.float32))      # (HA, HA)

    slab = jnp.zeros((SLAB_ROWS, SLAB_COLS), jnp.float32)
    slab = slab.at[ROW_WQK:ROW_WQK + ENC_SIZE, :].set(wqk)
    slab = slab.at[ROW_GG:ROW_GG + HA, :].set(gg)
    slab = slab.at[ROW_VPH:ROW_VPH + HA, 0:N_ACTIONS].set(vph)
    slab = slab.at[ROW_BE, :].set(p["be"][0])
    slab = slab.at[ROW_BS, :].set(bs[0])
    slab = slab.at[ROW_BL, 0:N_ACTIONS].set(bl[0])

    we_bf16 = p["we"].astype(jnp.bfloat16)                            # (F_IN, E) bf16
    return we_bf16, slab


@jax.jit
def dqn_forward(x, we_bf16, slab):
    xf = x.reshape(x.shape[0], -1).astype(jnp.float32)                # (B, F_IN)
    b = xf.shape[0]

    flops = 2 * b * F_IN * ENC_SIZE + 2 * b * 3 * ENC_SIZE * HA
    bytes_accessed = (we_bf16.size * 2 + xf.size * 4 + slab.size * 4
                      + b * N_ACTIONS * 4)

    return pl.pallas_call(
        dqn_kernel,
        out_shape=jax.ShapeDtypeStruct((b, N_ACTIONS), jnp.float32),
        grid=(1,),
        in_specs=[
            pl.BlockSpec((b, F_IN), lambda i: (0, 0)),                # whole batch at once
            pl.BlockSpec((F_IN, ENC_SIZE), lambda i: (0, 0)),         # encoder weight (bf16)
            pl.BlockSpec((SLAB_ROWS, SLAB_COLS), lambda i: (0, 0)),   # packed small params
        ],
        out_specs=pl.BlockSpec((b, N_ACTIONS), lambda i: (0, 0)),
        compiler_params=pltpu.CompilerParams(dimension_semantics=("arbitrary",)),
        cost_estimate=pl.CostEstimate(flops=flops,
                                      transcendentals=b * (HA + N_ACTIONS),
                                      bytes_accessed=bytes_accessed),
    )(xf, we_bf16, slab)


# --------------------------- parameter init ----------------------------------
def init_params(key):
    ks = jax.random.split(key, 16)

    def lin(kw, kb, fan_in, fan_out):
        bound = 1.0 / np.sqrt(fan_in)
        w_t = jax.random.uniform(kw, (fan_in, fan_out), jnp.float32, -bound, bound)
        b = jax.random.uniform(kb, (1, fan_out), jnp.float32, -bound, bound)
        return w_t, b

    we, be = lin(ks[0], ks[1], F_IN, ENC_SIZE)          # synthetic encoder linear
    wq, bq = lin(ks[2], ks[3], ENC_SIZE, ENC_SIZE)
    wk, bk = lin(ks[4], ks[5], EMB_DEPTH, ENC_SIZE)
    wv, bv = lin(ks[6], ks[7], EMB_DEPTH, ENC_SIZE)
    wo, bo = lin(ks[8], ks[9], ENC_SIZE, ENC_SIZE)
    wh, bh = lin(ks[10], ks[11], ENC_SIZE, N_ACTIONS)
    emb = jax.random.normal(ks[12], (N_ACTIONS, EMB_DEPTH), jnp.float32)  # nn.Embedding default
    return dict(emb=emb, we=we, be=be, wq=wq, bq=bq, wk=wk, bk=bk,
                wv=wv, bv=bv, wo=wo, bo=bo, wh=wh, bh=bh)


# --------------------------- pure-JAX reference (unfolded, f32) ---------------
def dqn_reference(x, p):
    xf = x.reshape(x.shape[0], -1).astype(jnp.float32)
    enc = jnp.maximum(xf @ p["we"] + p["be"], 0.0)                    # (B, E)
    q = enc @ p["wq"] + p["bq"]                                       # (B, E)
    k = p["emb"] @ p["wk"] + p["bk"]                                  # (A, E)
    v = p["emb"] @ p["wv"] + p["bv"]                                  # (A, E)
    qh = q.reshape(-1, NUM_HEADS, HEAD_DIM) / np.sqrt(HEAD_DIM)       # (B, Hh, hd)
    kh = k.reshape(N_ACTIONS, NUM_HEADS, HEAD_DIM)
    vh = v.reshape(N_ACTIONS, NUM_HEADS, HEAD_DIM)
    s = jnp.einsum("bhd,ahd->bha", qh, kh)
    pattn = jax.nn.softmax(s, axis=-1)
    o = jnp.einsum("bha,ahd->bhd", pattn, vh).reshape(-1, ENC_SIZE)
    o = o @ p["wo"] + p["bo"]
    logits = o @ p["wh"] + p["bh"]
    return jax.nn.softmax(logits, axis=1)


# --------------------------------- main ---------------------------------------
if __name__ == "__main__":
    key = jax.random.PRNGKey(0)
    k_param, k_x = jax.random.split(key)
    params = init_params(k_param)
    we_bf16, slab = pack_params(params)
    x = jax.random.normal(k_x, (B, C, H, W), jnp.float32)             # NCHW like PyTorch

    out = dqn_forward(x, we_bf16, slab)
    out = jax.block_until_ready(out)

    ref = dqn_reference(x, params)
    assert out.shape == (B, N_ACTIONS)
    assert np.allclose(np.asarray(out), np.asarray(ref), rtol=1e-2, atol=1e-2), (
        f"max diff {np.max(np.abs(np.asarray(out) - np.asarray(ref)))}")
    print("KERNEL_OK")
</pallas_src>

<mosaic_0001>
module attributes {stable_mosaic.version = 11 : i64} {
  func.func @dqn_kernel(%arg0: i32, %arg1: memref<2x1024xf32, #tpu.memory_space<vmem>>, %arg2: memref<1024x32xbf16, #tpu.memory_space<vmem>>, %arg3: memref<104x32xf32, #tpu.memory_space<vmem>>, %arg4: memref<2x8xf32, #tpu.memory_space<vmem>>) attributes {dimension_semantics = [#tpu.dimension_semantics<arbitrary>], iteration_bounds = array<i64: 1>, scalar_prefetch = 0 : i64, scratch_operands = 0 : i64, tpu.core_type = #tpu.core_type<tc>, window_params = [{pipeline_mode = #tpu.pipeline_mode<synchronous>, transform_indices = @transform_0, window_bounds = array<i64: 2, 1024>}, {pipeline_mode = #tpu.pipeline_mode<synchronous>, transform_indices = @transform_1, window_bounds = array<i64: 1024, 32>}, {pipeline_mode = #tpu.pipeline_mode<synchronous>, transform_indices = @transform_2, window_bounds = array<i64: 104, 32>}, {pipeline_mode = #tpu.pipeline_mode<synchronous>, transform_indices = @transform_3, window_bounds = array<i64: 2, 8>}]} {
    %c0 = arith.constant 0 : index
    %c0_0 = arith.constant 0 : index
    %0 = vector.load %arg1[%c0, %c0_0] : memref<2x1024xf32, #tpu.memory_space<vmem>>, vector<2x1024xf32>
    %1 = arith.truncf %0 : vector<2x1024xf32> to vector<2x1024xbf16>
    %c0_1 = arith.constant 0 : index
    %c0_2 = arith.constant 0 : index
    %2 = vector.load %arg2[%c0_1, %c0_2] : memref<1024x32xbf16, #tpu.memory_space<vmem>>, vector<1024x32xbf16>
    %cst = arith.constant dense<0.000000e+00> : vector<2x32xf32>
    %3 = tpu.matmul %1, %2, %cst {dimension_numbers = #tpu.dot_dimension_numbers<[1], [0], [0], [1], [0, 0, 1, 1], [], []>} : vector<2x1024xbf16>, vector<1024x32xbf16>, vector<2x32xf32> -> vector<2x32xf32>
    %c96 = arith.constant 96 : index
    %c0_3 = arith.constant 0 : index
    %4 = vector.load %arg3[%c96, %c0_3] : memref<104x32xf32, #tpu.memory_space<vmem>>, vector<1x32xf32>
    %5 = vector.broadcast %4 : vector<1x32xf32> to vector<2x32xf32>
    %6 = arith.addf %3, %5 : vector<2x32xf32>
    %cst_4 = arith.constant 0.000000e+00 : f32
    %7 = vector.broadcast %cst_4 : f32 to vector<2x32xf32>
    %8 = arith.maximumf %6, %7 : vector<2x32xf32>
    %c0_5 = arith.constant 0 : index
    %c0_6 = arith.constant 0 : index
    %9 = vector.load %arg3[%c0_5, %c0_6] : memref<104x32xf32, #tpu.memory_space<vmem>>, vector<32x32xf32>
    %cst_7 = arith.constant dense<0.000000e+00> : vector<2x32xf32>
    %10 = tpu.matmul %8, %9, %cst_7 {dimension_numbers = #tpu.dot_dimension_numbers<[1], [0], [0], [1], [0, 0, 1, 1], [], []>} : vector<2x32xf32>, vector<32x32xf32>, vector<2x32xf32> -> vector<2x32xf32>
    %c97 = arith.constant 97 : index
    %c0_8 = arith.constant 0 : index
    %11 = vector.load %arg3[%c97, %c0_8] : memref<104x32xf32, #tpu.memory_space<vmem>>, vector<1x32xf32>
    %12 = vector.broadcast %11 : vector<1x32xf32> to vector<2x32xf32>
    %13 = arith.addf %10, %12 : vector<2x32xf32>
    %cst_9 = arith.constant dense<0xFF800000> : vector<2xf32>
    %14 = vector.multi_reduction <maximumf>, %13, %cst_9 [1] : vector<2x32xf32> to vector<2xf32>
    %15 = vector.shape_cast %14 : vector<2xf32> to vector<2x1xf32>
    %16 = vector.broadcast %15 : vector<2x1xf32> to vector<2x32xf32>
    %17 = arith.subf %13, %16 : vector<2x32xf32>
    %18 = math.exp %17 : vector<2x32xf32>
    %c32 = arith.constant 32 : index
    %c0_10 = arith.constant 0 : index
    %19 = vector.load %arg3[%c32, %c0_10] : memref<104x32xf32, #tpu.memory_space<vmem>>, vector<32x32xf32>
    %cst_11 = arith.constant dense<0.000000e+00> : vector<2x32xf32>
    %20 = tpu.matmul %18, %19, %cst_11 {dimension_numbers = #tpu.dot_dimension_numbers<[1], [0], [0], [1], [0, 0, 1, 1], [], []>} : vector<2x32xf32>, vector<32x32xf32>, vector<2x32xf32> -> vector<2x32xf32>
    %21 = tpu.reciprocal %20 {approx = true} : vector<2x32xf32> -> vector<2x32xf32>
    %22 = arith.mulf %18, %21 : vector<2x32xf32>
    %c64 = arith.constant 64 : index
    %c0_12 = arith.constant 0 : index
    %23 = vector.load %arg3[%c64, %c0_12] : memref<104x32xf32, #tpu.memory_space<vmem>>, vector<32x8xf32>
    %cst_13 = arith.constant dense<0.000000e+00> : vector<2x8xf32>
    %24 = tpu.matmul %22, %23, %cst_13 {dimension_numbers = #tpu.dot_dimension_numbers<[1], [0], [0], [1], [0, 0, 1, 1], [], []>} : vector<2x32xf32>, vector<32x8xf32>, vector<2x8xf32> -> vector<2x8xf32>
    %c98 = arith.constant 98 : index
    %c0_14 = arith.constant 0 : index
    %25 = vector.load %arg3[%c98, %c0_14] : memref<104x32xf32, #tpu.memory_space<vmem>>, vector<1x8xf32>
    %26 = vector.broadcast %25 : vector<1x8xf32> to vector<2x8xf32>
    %27 = arith.addf %24, %26 : vector<2x8xf32>
    %cst_15 = arith.constant dense<0xFF800000> : vector<2xf32>
    %28 = vector.multi_reduction <maximumf>, %27, %cst_15 [1] : vector<2x8xf32> to vector<2xf32>
    %29 = vector.shape_cast %28 : vector<2xf32> to vector<2x1xf32>
    %30 = vector.broadcast %29 : vector<2x1xf32> to vector<2x8xf32>
    %31 = arith.subf %27, %30 : vector<2x8xf32>
    %32 = math.exp %31 : vector<2x8xf32>
    %cst_16 = arith.constant dense<0.000000e+00> : vector<2xf32>
    %33 = vector.multi_reduction <add>, %32, %cst_16 [1] : vector<2x8xf32> to vector<2xf32>
    %34 = vector.shape_cast %33 : vector<2xf32> to vector<2x1xf32>
    %35 = tpu.reciprocal %34 {approx = true} : vector<2x1xf32> -> vector<2x1xf32>
    %36 = vector.broadcast %35 : vector<2x1xf32> to vector<2x8xf32>
    %37 = arith.mulf %32, %36 : vector<2x8xf32>
    %c0_17 = arith.constant 0 : index
    %c0_18 = arith.constant 0 : index
    %38 = vector.load %arg4[%c0_17, %c0_18] : memref<2x8xf32, #tpu.memory_space<vmem>>, vector<2x8xf32>
    tpu.vector_store %arg4[%c0_17, %c0_18], %37 {strides = array<i32>} : memref<2x8xf32, #tpu.memory_space<vmem>>, vector<2x8xf32>,
    return
  }
  func.func @transform_0(%arg0: i32) -> (i32, i32) {
    %c0_i32 = arith.constant 0 : i32
    %c0_i32_0 = arith.constant 0 : i32
    %c0_i32_1 = arith.constant 0 : i32
    return %c0_i32, %c0_i32_0 : i32, i32
  }
  func.func @transform_1(%arg0: i32) -> (i32, i32) {
    %c0_i32 = arith.constant 0 : i32
    %c0_i32_0 = arith.constant 0 : i32
    %c0_i32_1 = arith.constant 0 : i32
    return %c0_i32, %c0_i32_0 : i32, i32
  }
  func.func @transform_2(%arg0: i32) -> (i32, i32) {
    %c0_i32 = arith.constant 0 : i32
    %c0_i32_0 = arith.constant 0 : i32
    %c0_i32_1 = arith.constant 0 : i32
    return %c0_i32, %c0_i32_0 : i32, i32
  }
  func.func @transform_3(%arg0: i32) -> (i32, i32) {
    %c0_i32 = arith.constant 0 : i32
    %c0_i32_0 = arith.constant 0 : i32
    %c0_i32_1 = arith.constant 0 : i32
    return %c0_i32, %c0_i32_0 : i32, i32
  }
}

</mosaic_0001>

<bundles_post_ra>
// kernel: dqn_forward.1
= control target key start
LH: loop header
LB: loop body
LE: loop exit
PB: predicated region body
PF: predicated region fallthrough
CT: control target
= control target key end

     0   :  { %v24_v28 = vlaneseq  ;;  %v1353_v36 = vmov 1983009808   ;;  %s1654_s0 = inlined_call_operand.vmem [shape: f32[2,1024], index: 0, kind: input, shape index: {}]   ;;  %s1655_s1 = inlined_call_operand.vmem [shape: bf16[1024,32], index: 1, kind: input, shape index: {}]   ;;  %s1656_s2 = inlined_call_operand.vmem [shape: f32[104,32], index: 2, kind: input, shape index: {}]   ;;  %s1657_s3 = inlined_call_operand.hbm [shape: f32[2,8], index: 3, kind: output, shape index: {}]  }
   0x1   :  { %v1255_v0 = vld [vmem:[%s1655_s1 + $0x40] sm:$0xff]   ;;  %v1259_v4 = vld [vmem:[%s1655_s1 + $0x48] sm:$0xff]   ;;  %v1263_v8 = vld [vmem:[%s1655_s1 + $0x50] sm:$0xff]   ;;  %v22_v37 = vunpack.c.l.s4 %v1353_v36 }
   0x2   :  { %v1256_v1 = vld [vmem:[%s1655_s1 + $0xc0] sm:$0xff]   ;;  %1096 = vmatprep.subr.bf16.mxu0 %v1255_v0  ;;  %v1260_v5 = vld [vmem:[%s1655_s1 + $0xc8] sm:$0xff]   ;;  %v1264_v9 = vld [vmem:[%s1655_s1 + $0xd0] sm:$0xff]   ;;  %v25_v33 = vshrl.u32 %v24_v28, 7 }
   0x3   :  { %v1257_v2 = vld [vmem:[%s1655_s1] sm:$0xff]   ;;  %1118 = vmatprep.subr.bf16.mxu1 %v1256_v1  ;;  %v1261_v6 = vld [vmem:[%s1655_s1 + $0x8] sm:$0xff]   ;;  %v1265_v10 = vld [vmem:[%s1655_s1 + $0x10] sm:$0xff]   ;;  %v23_v39 = vunpack.c.0.s8 %v22_v37 }
   0x4   :  { %v1258_v3 = vld [vmem:[%s1655_s1 + $0x80] sm:$0xff]   ;;  %1097 = vmatpush3.bf16.msra.mxu0 %v1257_v2  ;;  %v1262_v7 = vld [vmem:[%s1655_s1 + $0x88] sm:$0xff]   ;;  %v1266_v11 = vld [vmem:[%s1655_s1 + $0x90] sm:$0xff]  }
   0x5   :  { %1119 = vmatpush3.bf16.msra.mxu1 %v1258_v3  ;;  %1098 = vmatprep.subr.bf16.mxu0 %v1259_v4  ;;  %v1267_v12 = vld [vmem:[%s1655_s1 + $0x58] sm:$0xff]   ;;  %v1271_v16 = vld [vmem:[%s1655_s1 + $0x60] sm:$0xff]   ;;  %v1275_v20 = vld [vmem:[%s1655_s1 + $0x68] sm:$0xff]   ;;  %v1483_v41 = vsub.s32 %v23_v39, %v25_v33 }
   0x6   :  { %1120 = vmatprep.subr.bf16.mxu1 %v1260_v5  ;;  %v1268_v13 = vld [vmem:[%s1655_s1 + $0xd8] sm:$0xff]   ;;  %v1272_v17 = vld [vmem:[%s1655_s1 + $0xe0] sm:$0xff]   ;;  %v1276_v21 = vld [vmem:[%s1655_s1 + $0xe8] sm:$0xff]  }
   0x7   :  { %v1269_v14 = vld [vmem:[%s1655_s1 + $0x18] sm:$0xff]   ;;  %v1273_v18 = vld [vmem:[%s1655_s1 + $0x20] sm:$0xff]   ;;  %v1277_v22 = vld [vmem:[%s1655_s1 + $0x28] sm:$0xff]  }
   0x8   :  { %1099 = vmatpush3.bf16.msra.mxu0 %v1261_v6  ;;  %v1270_v15 = vld [vmem:[%s1655_s1 + $0x98] sm:$0xff]   ;;  %v1274_v19 = vld [vmem:[%s1655_s1 + $0xa0] sm:$0xff]   ;;  %v1278_v23 = vld [vmem:[%s1655_s1 + $0xa8] sm:$0xff]  }
   0x9   :  { %1121 = vmatpush3.bf16.msra.mxu1 %v1262_v7  ;;  %1100 = vmatprep.subr.bf16.mxu0 %v1263_v8  ;;  %v1279_v24 = vld [vmem:[%s1655_s1 + $0x70] sm:$0xff]   ;;  %v1283_v29 = vld [vmem:[%s1655_s1 + $0x78] sm:$0xff]   ;;  %v16_v34 = vld [vmem:[%s1654_s0] sm:$0xff] }
   0xa   :  { %1122 = vmatprep.subr.bf16.mxu1 %v1264_v9  ;;  %v1280_v25 = vld [vmem:[%s1655_s1 + $0xf0] sm:$0xff]   ;;  %v1284_v30 = vld [vmem:[%s1655_s1 + $0xf8] sm:$0xff]   ;;  %v1288_v35 = vld [vmem:[%s1655_s1 + $0x140] sm:$0xff]   ;;  %v20_v40 = vcombine.high %v16_v34, %v16_v34  ;;  %v27_v42 = vrot.slane %v16_v34, %v1483_v41 }
   0xb   :  { %v1281_v26 = vld [vmem:[%s1655_s1 + $0x30] sm:$0xff]   ;;  %v1285_v31 = vld [vmem:[%s1655_s1 + $0x38] sm:$0xff]   ;;  %v1289_v38 = vld [vmem:[%s1655_s1 + $0x1c0] sm:$0xff]  }
   0xc   :  { %1101 = vmatpush3.bf16.msra.mxu0 %v1265_v10  ;;  %v1282_v27 = vld [vmem:[%s1655_s1 + $0xb0] sm:$0xff]   ;;  %v1286_v32 = vld [vmem:[%s1655_s1 + $0xb8] sm:$0xff]   ;;  %v34_v43 = vrot.slane %v20_v40, %v1483_v41  ;;  %v35_v44 = vcombine.high %v27_v42, %v27_v42  ;;  %v1290_v46 = vld [vmem:[%s1655_s1 + $0x100] sm:$0xff]   ;;  %v62_v47 = vpack.c.bf16 %v27_v42, %v27_v42 }
   0xd   :  { %1123 = vmatpush3.bf16.msra.mxu1 %v1266_v11  ;;  %1102 = vmatprep.subr.bf16.mxu0 %v1267_v12  ;;  %v1291_v49 = vld [vmem:[%s1655_s1 + $0x180] sm:$0xff]   ;;  %v1292_v52 = vld [vmem:[%s1655_s1 + $0x148] sm:$0xff]   ;;  %v1296_v56 = vld [vmem:[%s1655_s1 + $0x150] sm:$0xff]  }
   0xe   :  { %1124 = vmatprep.subr.bf16.mxu1 %v1268_v13  ;;  %v36_v45 = vcombine.high %v34_v43, %v34_v43  ;;  %v64_v48 = vpack.c.bf16 %v34_v43, %v34_v43  ;;  %v63_v50 = vpack.c.bf16 %v35_v44, %v35_v44  ;;  %v1293_v53 = vld [vmem:[%s1655_s1 + $0x1c8] sm:$0xff]   ;;  %v1297_v57 = vld [vmem:[%s1655_s1 + $0x1d0] sm:$0xff]   ;;  %v1300_v60 = vld [vmem:[%s1655_s1 + $0x158] sm:$0xff]  }
   0xf   :  { %v1294_v54 = vld [vmem:[%s1655_s1 + $0x108] sm:$0xff]   ;;  %v1298_v58 = vld [vmem:[%s1655_s1 + $0x110] sm:$0xff]   ;;  %v1301_v61 = vld [vmem:[%s1655_s1 + $0x1d8] sm:$0xff]  }
  0x10   :  { %1103 = vmatpush3.bf16.msra.mxu0 %v1269_v14  ;;  %v65_v51 = vpack.c.bf16 %v36_v45, %v36_v45  ;;  %619 = vmatprep.mubr.bf16.mxu0 %v63_v50  ;;  %v1295_v55 = vld [vmem:[%s1655_s1 + $0x188] sm:$0xff]   ;;  %v1299_v59 = vld [vmem:[%s1655_s1 + $0x190] sm:$0xff]   ;;  %v1302_v62 = vld [vmem:[%s1655_s1 + $0x118] sm:$0xff]  }
  0x11   :  { %1125 = vmatpush3.bf16.msra.mxu1 %v1270_v15  ;;  %1104 = vmatprep.subr.bf16.mxu0 %v1271_v16  ;;  %v1303_v63 = vld [vmem:[%s1655_s1 + $0x198] sm:$0xff]   ;;  %v1304_v0 = vld [vmem:[%s1655_s1 + $0x160] sm:$0xff]   ;;  %v1308_v4 = vld [vmem:[%s1655_s1 + $0x168] sm:$0xff]  }
  0x12   :  { %1126 = vmatprep.subr.bf16.mxu1 %v1272_v17  ;;  %659 = vmatprep.mubr.bf16.mxu1 %v65_v51  ;;  %v1305_v1 = vld [vmem:[%s1655_s1 + $0x1e0] sm:$0xff]   ;;  %v1309_v5 = vld [vmem:[%s1655_s1 + $0x1e8] sm:$0xff]   ;;  %v1312_v8 = vld [vmem:[%s1655_s1 + $0x170] sm:$0xff]  }
  0x13   :  { %v1306_v2 = vld [vmem:[%s1655_s1 + $0x120] sm:$0xff]   ;;  %v1310_v6 = vld [vmem:[%s1655_s1 + $0x128] sm:$0xff]   ;;  %v1313_v9 = vld [vmem:[%s1655_s1 + $0x1f0] sm:$0xff]  }
  0x14   :  { %1105 = vmatpush3.bf16.msra.mxu0 %v1273_v18  ;;  %v1307_v3 = vld [vmem:[%s1655_s1 + $0x1a0] sm:$0xff]   ;;  %v1311_v7 = vld [vmem:[%s1655_s1 + $0x1a8] sm:$0xff]  }
  0x15   :  { %1127 = vmatpush3.bf16.msra.mxu1 %v1274_v19  ;;  %1106 = vmatprep.subr.bf16.mxu0 %v1275_v20  ;;  %v17_v10 = vld [vmem:[%s1654_s0 + $0x8] sm:$0xff] }
  0x16   :  { %1128 = vmatprep.subr.bf16.mxu1 %v1276_v21 }
  0x18   :  { %1107 = vmatpush3.bf16.msra.mxu0 %v1277_v22 }
  0x19   :  { %1129 = vmatpush3.bf16.msra.mxu1 %v1278_v23  ;;  %1108 = vmatprep.subr.bf16.mxu0 %v1279_v24 }
  0x1a   :  { %1130 = vmatprep.subr.bf16.mxu1 %v1280_v25 }
  0x1c   :  { %1109 = vmatpush3.bf16.msra.mxu0 %v1281_v26 }
  0x1d   :  { %1131 = vmatpush3.bf16.msra.mxu1 %v1282_v27  ;;  %1110 = vmatprep.subr.bf16.mxu0 %v1283_v29 }
  0x1e   :  { %1132 = vmatprep.subr.bf16.mxu1 %v1284_v30 }
  0x20   :  { %1111 = vmatpush3.bf16.msra.mxu0 %v1285_v31 }
  0x21   :  { %1133 = vmatpush3.bf16.msra.mxu1 %v1286_v32  ;;  %1140 = vmatprep.subr.bf16.mxu0 %v1288_v35 }
  0x22   :  { %1162 = vmatprep.subr.bf16.mxu1 %v1289_v38 }
  0x23   :  { %620 = vmatmul.mubr.bf16.vlgmr.msra.gmra.mrb[0].mxu0 %v62_v47 }
  0x24   :  { %660 = vmatmul.mubr.bf16.vlgmr.msra.gmra.mrb[0].mxu1 %v64_v48  ;;  %1141 = vmatpush3.bf16.msra.mxu0 %v1290_v46 }
  0x25   :  { %1163 = vmatpush3.bf16.msra.mxu1 %v1291_v49  ;;  %1142 = vmatprep.subr.bf16.mxu0 %v1292_v52 }
  0x26   :  { %1164 = vmatprep.subr.bf16.mxu1 %v1293_v53 }
  0x28   :  { %1143 = vmatpush3.bf16.msra.mxu0 %v1294_v54 }
  0x29   :  { %1165 = vmatpush3.bf16.msra.mxu1 %v1295_v55  ;;  %1144 = vmatprep.subr.bf16.mxu0 %v1296_v56 }
  0x2a   :  { %1166 = vmatprep.subr.bf16.mxu1 %v1297_v57 }
  0x2c   :  { %1145 = vmatpush3.bf16.msra.mxu0 %v1298_v58 }
  0x2d   :  { %1167 = vmatpush3.bf16.msra.mxu1 %v1299_v59  ;;  %1146 = vmatprep.subr.bf16.mxu0 %v1300_v60 }
  0x2e   :  { %1168 = vmatprep.subr.bf16.mxu1 %v1301_v61 }
  0x30   :  { %1147 = vmatpush3.bf16.msra.mxu0 %v1302_v62 }
  0x31   :  { %1169 = vmatpush3.bf16.msra.mxu1 %v1303_v63  ;;  %1148 = vmatprep.subr.bf16.mxu0 %v1304_v0 }
  0x32   :  { %1170 = vmatprep.subr.bf16.mxu1 %v1305_v1 }
  0x34   :  { %1149 = vmatpush3.bf16.msra.mxu0 %v1306_v2 }
  0x35   :  { %1171 = vmatpush3.bf16.msra.mxu1 %v1307_v3  ;;  %1150 = vmatprep.subr.bf16.mxu0 %v1308_v4 }
  0x36   :  { %1172 = vmatprep.subr.bf16.mxu1 %v1309_v5 }
  0x37   :  { %8 = vsyncpa [#allocation3], 0  ;;  %v44_v11 = vrot.slane %v17_v10, %v1483_v41  ;;  %v37_v12 = vcombine.high %v17_v10, %v17_v10  ;;  %v1314_v13 = vld [vmem:[%s1655_s1 + $0x130] sm:$0xff]   ;;  %v1316_v17 = vld [vmem:[%s1655_s1 + $0x178] sm:$0xff]   ;;  %v1354_v29 = vmov 0.0|0.0   ;;  %vm1355_vm0 = vmmov 0  }
  0x38   :  { %1151 = vmatpush3.bf16.msra.mxu0 %v1310_v6  ;;  %v1315_v14 = vld [vmem:[%s1655_s1 + $0x1b0] sm:$0xff]   ;;  %v1317_v18 = vld [vmem:[%s1655_s1 + $0x1f8] sm:$0xff]   ;;  %v748_v26 = vld [vmem:[%s1656_s2] sm:$0xff]  ;;  %v1356_v33 = vmov 0.0   ;;  %vm757_vm1 = vcmask 261120   ;;  %vm831_vm2 = vcmask 254976  }
  0x39   :  { %1173 = vmatpush3.bf16.msra.mxu1 %v1311_v7  ;;  %v52_v15 = vcombine.high %v44_v11, %v44_v11  ;;  %v51_v16 = vrot.slane %v37_v12, %v1483_v41  ;;  %1152 = vmatprep.subr.bf16.mxu0 %v1312_v8  ;;  %v1318_v21 = vld [vmem:[%s1655_s1 + $0x138] sm:$0xff]   ;;  %v66_v24 = vpack.c.bf16 %v44_v11, %v44_v11  ;;  %v749_v27 = vld [vmem:[%s1656_s2 + $0x8] sm:$0xff]  ;;  %v750_v30 = vld [vmem:[%s1656_s2 + $0x10] sm:$0xff]  ;;  %vm999_vm3 = vcmask 58368   ;;  %s1357_s9 = smov [#allocation2]  }
  0x3a   :  { %1174 = vmatprep.subr.bf16.mxu1 %v1313_v9  ;;  %v1319_v22 = vld [vmem:[%s1655_s1 + $0x1b8] sm:$0xff]   ;;  %v1233_v28 = vpack.c.bf16 %v749_v27, %v748_v26  ;;  %v1026_v36 = vld [vmem:[%s1656_s2 + $0x60] ss:$0 sm:$0xff]  ;;  %v1091_v60 = vld [vmem:[%s1656_s2 + $0x61] ss:$0 sm:$0xff]  ;;  %s1018_s10 = sshll.u32 %s1357_s9, 4  ;;  %s1019_s10 = int_to_ptr.vmem [resolvable:$true] %s1018_s10 }
  0x3b   :  { %v67_v19 = vpack.c.bf16 %v52_v15, %v52_v15  ;;  %v53_v20 = vcombine.high %v51_v16, %v51_v16  ;;  %v68_v25 = vpack.c.bf16 %v51_v16, %v51_v16  ;;  %v751_v31 = vld [vmem:[%s1656_s2 + $0x18] sm:$0xff]  ;;  %v838_v1 = vld [vmem:[%s1656_s2 + $0x20] sm:$0xff]  ;;  %v839_v2 = vld [vmem:[%s1656_s2 + $0x28] sm:$0xff]  ;;  %p1334_p1 = scmp.lt.s32.totalorder %s1019_s10, %s1019_s10 }
  0x3c   :  { %1153 = vmatpush3.bf16.msra.mxu0 %v1314_v13  ;;  %v1236_v32 = vpack.c.bf16 %v751_v31, %v750_v30  ;;  %v840_v3 = vld [vmem:[%s1656_s2 + $0x30] sm:$0xff]  ;;  %v1239_v4 = vpack.c.bf16 %v839_v2, %v838_v1  ;;  %v841_v5 = vld [vmem:[%s1656_s2 + $0x38] sm:$0xff]  ;;  %v917_v11 = vld [vmem:[%s1656_s2 + $0x40] sm:$0xff] }
  0x3d   :  { %1175 = vmatpush3.bf16.msra.mxu1 %v1315_v14  ;;  %v69_v23 = vpack.c.bf16 %v53_v20, %v53_v20  ;;  %1154 = vmatprep.subr.bf16.mxu0 %v1316_v17  ;;  %v1242_v6 = vpack.c.bf16 %v841_v5, %v840_v3  ;;  %v918_v12 = vld [vmem:[%s1656_s2 + $0x48] sm:$0xff]  ;;  %v919_v14 = vld [vmem:[%s1656_s2 + $0x50] sm:$0xff]  ;;  %v920_v15 = vld [vmem:[%s1656_s2 + $0x58] sm:$0xff] }
  0x3e   :  { %1176 = vmatprep.subr.bf16.mxu1 %v1317_v18  ;;  %699 = vmatprep.mubr.bf16.mxu0 %v67_v19  ;;  %v1245_v13 = vpack.c.bf16 %v918_v12, %v917_v11  ;;  %v1248_v16 = vpack.c.bf16 %v920_v15, %v919_v14 }
  0x3f   :  { %739 = vmatprep.mubr.bf16.mxu1 %v69_v23 }
  0x40   :  { %1155 = vmatpush3.bf16.msra.mxu0 %v1318_v21  ;;  %v1094_v21 = vld [vmem:[%s1656_s2 + $0x62] ss:$0 sm:$0xff]  ;;  %s1329_s2 = scalar_lea.vmem %s1019_s10, 32 }
  0x41   :  { %1177 = vmatpush3.bf16.msra.mxu1 %v1319_v22  ;;  %1232 = vmatprep.subr.bf16.mxu0 %v1354_v29  ;;  %p1330_p0 = scmp.ne.s32.totalorder %s1019_s10, %s1329_s2  ;;  %p1335_p2 = scmp.lt.s32.totalorder %s1329_s2, %s1329_s2 }
  0x42   :  { %1238 = vmatprep.subr.bf16.mxu1 %v1354_v29 }
  0x43   :  { %700 = vmatmul.mubr.bf16.vlgmr.msra.gmra.mrb[4].mxu0 %v66_v24  ;;  %p1336_p3 = por %p1335_p2, %p1334_p1 }
  0x44   :  { %740 = vmatmul.mubr.bf16.vlgmr.msra.gmra.mrb[4].mxu1 %v68_v25  ;;  %1234 = vmatpush3.bf16.msra.mxu0 %v1233_v28 }
  0x45   :  { %1235 = vmatprep.subr.bf16.mxu0 %v1354_v29  ;;  %1207 = vmatprep.mubr.msk.f32.mxu0 %vm1355_vm0, %v1356_v33  ;;  %p1337_p4 = pnand %p1336_p3, %p1330_p0 }
  0x46   :  { %1218 = vmatprep.mubr.msk.f32.mxu1 %vm1355_vm0, %v1356_v33  ;;  %1240 = vmatpush3.bf16.msra.mxu1 %v1239_v4 }
  0x47   :  { %1241 = vmatprep.subr.bf16.mxu1 %v1354_v29 }
  0x48   :  { %1237 = vmatpush3.bf16.msra.mxu0 %v1236_v32 }
  0x49   :  { %1244 = vmatprep.subr.bf16.mxu0 %v1354_v29 }
  0x4a   :  { %1243 = vmatpush3.bf16.msra.mxu1 %v1242_v6 }
  0xf6   :  { %v1112_v34 = vpop.f32.mrb[0].mxu0 }
  0xf7   :  { %v1134_v35 = vpop.f32.mrb[0].mxu1  ;;  %v1113_v37 = vpop.f32.mrb[1].mxu0 }
  0xf8   :  { %v1135_v38 = vpop.f32.mrb[1].mxu1  ;;  %v1114_v39 = vadd.f32 %v1113_v37, %v1112_v34  ;;  %v1115_v41 = vpop.f32.mrb[2].mxu0 }
  0xf9   :  { %v1136_v40 = vadd.f32 %v1135_v38, %v1134_v35  ;;  %v1137_v42 = vpop.f32.mrb[2].mxu1  ;;  %v1116_v43 = vpop.f32.mrb[3].mxu0 }
  0xfa   :  { %v1138_v44 = vpop.f32.mrb[3].mxu1  ;;  %v622_v45 = vadd.f32 %v1114_v39, %v1026_v36 }
  0xfc   :  { %v662_v46 = vadd.f32 %v1136_v40, %v622_v45 }
 0x116   :  { %v1156_v47 = vpop.f32.mrb[4].mxu0 }
 0x117   :  { %v1178_v48 = vpop.f32.mrb[4].mxu1  ;;  %v1157_v49 = vpop.f32.mrb[5].mxu0 }
 0x118   :  { %v1179_v50 = vpop.f32.mrb[5].mxu1  ;;  %v1158_v51 = vadd.f32 %v1157_v49, %v1156_v47  ;;  %v1159_v53 = vpop.f32.mrb[6].mxu0 }
 0x119   :  { %v1180_v52 = vadd.f32 %v1179_v50, %v1178_v48  ;;  %v1181_v54 = vpop.f32.mrb[6].mxu1  ;;  %v1160_v55 = vpop.f32.mrb[7].mxu0 }
 0x11a   :  { %v1182_v56 = vpop.f32.mrb[7].mxu1  ;;  %v702_v57 = vadd.f32 %v1158_v51, %v662_v46 }
 0x11c   :  { %v742_v58 = vadd.f32 %v1180_v52, %v702_v57 }
 0x11e   :  { %v747_v59 = vmax.f32 %v742_v58, 0.0 }
 0x120   :  { %1208 = vmatmul.mubr.msk.f32.vlgmr.msra.gmra.mrb[8].mxu0 %vm757_vm1, %v747_v59 }
 0x121   :  { %1229 = vmatprep.mubr.msk.f32.mxu0 %vm1355_vm0, %v1356_v33  ;;  %1246 = vmatpush3.bf16.msra.mxu0 %v1245_v13 }
 0x122   :  { %1247 = vmatprep.subr.bf16.mxu0 %v1354_v29 }
 0x125   :  { %1249 = vmatpush3.bf16.msra.mxu0 %v1248_v16 }
 0x1f3   :  { %v827_v61 = vpop.f32.mrb[8].mxu0 }
 0x1f4   :  { %v828_v62 = vadd.f32 %v1091_v60, %v827_v61  ;;  %v1209_v63 = vpop.f32.mrb[9].mxu0 }
 0x1f6   :  { %v832_v0 = vsel %vm831_vm2, %v828_v62, -inf }
 0x1f7   :  { %833 = vmax.xlane.f32.xlu0 %v832_v0 }
 0x284   :  { %v834_v7 = vpop.xlane.xlu0 %833 }
 0x285   :  { %v835_v8 = vsub.f32 %v828_v62, %v834_v7 }
 0x287   :  { %v836_v9 = vmul.f32 1.442695, %v835_v8 }
 0x289   :  { %1321 = vpow2.f32 %v836_v9 }
 0x293   :  { %v1322_v10 = vpop.eup %1321 }
 0x294   :  { %1219 = vmatmul.mubr.msk.f32.vlgmr.msra.gmra.mrb[8].mxu1 %vm757_vm1, %v1322_v10 }
 0x367   :  { %v911_v17 = vpop.f32.mrb[8].mxu1 }
 0x368   :  { %1323 = vrcp.f32 %v911_v17  ;;  %v1220_v18 = vpop.f32.mrb[9].mxu1 }
 0x372   :  { %v1324_v19 = vpop.eup %1323 }
 0x373   :  { %v916_v20 = vmul.f32 %v1324_v19, %v1322_v10 }
 0x375   :  { %1230 = vmatmul.mubr.msk.f32.vlgmr.msra.gmra.mrb[10].mxu0 %vm757_vm1, %v916_v20 }
 0x448   :  { %v995_v22 = vpop.f32.mrb[10].mxu0 }
 0x449   :  { %v996_v23 = vadd.f32 %v1094_v21, %v995_v22  ;;  %v1231_v24 = vpop.f32.mrb[11].mxu0 }
 0x44b   :  { %v1000_v25 = vsel %vm999_vm3, %v996_v23, -inf }
 0x44c   :  { %1001 = vmax.xlane.f32.xlu0 %v1000_v25 }
 0x4d9   :  { %v1002_v26 = vpop.xlane.xlu0 %1001 }
 0x4da   :  { %v1003_v27 = vsub.f32 %v996_v23, %v1002_v26 }
 0x4dc   :  { %v1004_v28 = vmul.f32 1.442695, %v1003_v27 }
 0x4de   :  { %1325 = vpow2.f32 %v1004_v28 }
 0x4e8   :  { %v1326_v29 = vpop.eup %1325 }
 0x4e9   :  { %v1006_v30 = vsel %vm999_vm3, %v1326_v29, 0.0 }
 0x4ea   :  { %1007 = vadd.xlane.f32.xlu1 %v1006_v30 }
 0x577   :  { %v1008_v31 = vpop.xlane.xlu1 %1007 }
 0x578   :  { %1327 = vrcp.f32 %v1008_v31 }
 0x582   :  { %v1328_v32 = vpop.eup %1327 }
 0x583   :  { %v1010_v33 = vmul.f32 %v1328_v32, %v1326_v29 }
 0x585   :  { %1011 = vst.msk [vmem:[#allocation2] sm:$0x3] %vm999_vm3, %v1010_v33 }
 0x586   :  { %1340 = shalt.err (!%p1337_p4)
}
 0x587   :  { %s1341_s12 = scalar_lea.hbm %s1657_s3, 32 }
 0x588   :  { %p1342_p5 = scmp.ne.s32.totalorder %s1657_s3, %s1341_s12  ;;  %p1345_p6 = scmp.lt.u32.totalorder %s1341_s12, %s1657_s3 }
 0x58a   :  { %p1347_p7 = pnand %p1345_p6, %p1342_p5 }
 0x58c   :  { %1350 = shalt.err (!%p1347_p7)
}
 0x58d   :  { %1021 = dma.vmem_to_hbm [thread:$0]  %s1019_s10, 32, %s1657_s3, [#allocation3]  }
 0x58e   :  { %1351 = dma.done.wait [#allocation3], 32  }
 0x58f   :  { %1352 = vsyncadd [#allocation3], 4294967264 }
 0x590   :  { %1025 = vsyncpa [#allocation3], 1 }

</bundles_post_ra>
